<compile_context>
chip_gen: v5e
topology: v5e:2x2
jax: 0.10.0
libtpu: 0.0.40
codegen_flags: <defaults>
</compile_context>

<pallas_src>
import functools

import jax
import jax.numpy as jnp
from jax.experimental import pallas as pl
from jax.experimental.pallas import tpu as pltpu

N_STATE = 4
N_CONTROL = 1
IN_DIM = N_STATE + N_CONTROL          # 5
HID_DIM = 10 * IN_DIM                 # 50
OUT_DIM = N_STATE                     # 4

H_PAD = 56                            # hidden 50 -> 56 (multiple of 8, f32 sublane-aligned)
_MAX_TB = 16384                       # per-step batch tile cap (VMEM never binds here)
_MIN_KERNEL_BATCH = 512               # below this, kernel launch/DMA overhead dominates


def _cdiv(a, b):
    return -(-a // b)


def _round_up(x, m):
    return _cdiv(x, m) * m


def _choose_tiling(B):
    """Pick (tb, nb): tb a multiple of 128 (lane-dense stores), nb even and >= 2
    so the 'parallel' batch axis shards across both v7x TensorCores, and as few
    (large) steps as possible so per-step pipeline overhead amortizes."""
    b128 = _round_up(B, 128)
    nb = 2
    while _round_up(_cdiv(b128, nb), 128) > _MAX_TB:
        nb += 2
    tb = _round_up(_cdiv(b128, nb), 128)
    return tb, nb


def mlp_kernel(xT_ref, w1t_ref, b1_ref, w2t_ref, b2_ref, o_ref):
    # Feature-major: the batch dim is the 128-lane axis -> lane-dense loads and
    # an unmasked lane-dense output store.
    xT = xT_ref[...]                                          # [IN_DIM, tb]
    h = jnp.dot(w1t_ref[...], xT,
                preferred_element_type=jnp.float32)           # [H_PAD, tb]
    h = jnp.tanh(h + b1_ref[...])                             # bias [H_PAD,1] broadcast
    o_ref[...] = jnp.dot(w2t_ref[...], h,
                         preferred_element_type=jnp.float32) + b2_ref[...]


def _pack_params(w1, b1, w2, b2):
    """Pad only the (tiny) parameters: hidden 50 -> H_PAD.  Streamed dims
    (IN_DIM=5, OUT_DIM=4) are left unpadded.  Zero padding is mathematically
    inert: tanh(0)=0 and the matching w2 columns are zero."""
    w1t = jnp.zeros((H_PAD, IN_DIM), jnp.float32).at[:HID_DIM, :].set(
        w1.T.astype(jnp.float32))
    b1c = jnp.zeros((H_PAD, 1), jnp.float32).at[:HID_DIM, 0].set(
        b1.reshape(-1).astype(jnp.float32))
    w2t = jnp.zeros((OUT_DIM, H_PAD), jnp.float32).at[:, :HID_DIM].set(
        w2.T.astype(jnp.float32))
    b2c = b2.reshape(OUT_DIM, 1).astype(jnp.float32)
    return w1t, b1c, w2t, b2c


def _mlp_featmajor_call(xT, w1t, b1c, w2t, b2c, *, tb, nb):
    """xT: [IN_DIM, B] f32 -> yT: [OUT_DIM, B] f32 via the Pallas kernel."""
    B = xT.shape[1]
    b_pad = tb * nb
    if b_pad != B:
        # Padded batch columns produce finite garbage that is sliced off below.
        xT = jnp.pad(xT, ((0, 0), (0, b_pad - B)))

    yT = pl.pallas_call(
        mlp_kernel,
        out_shape=jax.ShapeDtypeStruct((OUT_DIM, b_pad), jnp.float32),
        grid_spec=pltpu.PrefetchScalarGridSpec(
            num_scalar_prefetch=0,
            grid=(nb,),
            in_specs=[
                # streamed activations: lane-dense batch tile, K dim unpadded
                # (block dim == full array dim is legal).
                pl.BlockSpec((IN_DIM, tb), lambda i: (0, i)),
                # weights / biases: constant index_map -> stay VMEM-resident
                # across grid steps (their double-buffers total a few KiB, so
                # the pl.Buffered(1) hygiene tweak is not worth the risk here).
                pl.BlockSpec((H_PAD, IN_DIM), lambda i: (0, 0)),
                pl.BlockSpec((H_PAD, 1), lambda i: (0, 0)),
                pl.BlockSpec((OUT_DIM, H_PAD), lambda i: (0, 0)),
                pl.BlockSpec((OUT_DIM, 1), lambda i: (0, 0)),
            ],
            out_specs=pl.BlockSpec((OUT_DIM, tb), lambda i: (0, i)),
        ),
        compiler_params=pltpu.CompilerParams(
            # batch tiles are independent -> megacore shard on v7x
            dimension_semantics=("parallel",),
        ),
    )(xT, w1t, b1c, w2t, b2c)

    return yT[:, :B]


def _forward_reference(x, w1, b1, w2, b2):
    return jnp.tanh(x @ w1 + b1) @ w2 + b2


@functools.partial(jax.jit, static_argnames=("min_kernel_batch",))
def network_forward_fm(xT, w1, b1, w2, b2, *, min_kernel_batch=_MIN_KERNEL_BATCH):
    """Preferred feature-major entry point (no layout round-trips).
    xT: [IN_DIM, B] f32 -> yT: [OUT_DIM, B] f32."""
    B = xT.shape[1]
    if B < min_kernel_batch:
        h = jnp.tanh(w1.T @ xT + b1.reshape(-1, 1))
        return w2.T @ h + b2.reshape(-1, 1)
    tb, nb = _choose_tiling(B)
    w1t, b1c, w2t, b2c = _pack_params(w1, b1, w2, b2)
    return _mlp_featmajor_call(xT.astype(jnp.float32), w1t, b1c, w2t, b2c,
                               tb=tb, nb=nb)


@functools.partial(jax.jit, static_argnames=("min_kernel_batch",))
def network_forward(x, w1, b1, w2, b2, *, min_kernel_batch=_MIN_KERNEL_BATCH):
    """Module-compatible wrapper: x [B, IN_DIM] -> [B, OUT_DIM].
    Jitted so the in/out transposes compile into the same program as the
    kernel; callers that can keep activations feature-major should use
    network_forward_fm directly."""
    B = x.shape[0]
    if B < min_kernel_batch:
        return _forward_reference(x, w1, b1, w2, b2)
    tb, nb = _choose_tiling(B)
    w1t, b1c, w2t, b2c = _pack_params(w1, b1, w2, b2)
    yT = _mlp_featmajor_call(x.T.astype(jnp.float32), w1t, b1c, w2t, b2c,
                             tb=tb, nb=nb)
    return yT.T


def init_params(key):
    """Deterministic init mimicking nn.Linear's U(-1/sqrt(fan_in), 1/sqrt(fan_in)).
    Weights stored as [in, out] (torch weight transposed) so forward is x @ W + b."""
    k1, k2, k3, k4 = jax.random.split(key, 4)
    bound1 = 1.0 / jnp.sqrt(IN_DIM)
    bound2 = 1.0 / jnp.sqrt(HID_DIM)
    w1 = jax.random.uniform(k1, (IN_DIM, HID_DIM), jnp.float32, -bound1, bound1)
    b1 = jax.random.uniform(k2, (1, HID_DIM), jnp.float32, -bound1, bound1)
    w2 = jax.random.uniform(k3, (HID_DIM, OUT_DIM), jnp.float32, -bound2, bound2)
    b2 = jax.random.uniform(k4, (1, OUT_DIM), jnp.float32, -bound2, bound2)
    return w1, b1, w2, b2


if __name__ == "__main__":
    key = jax.random.PRNGKey(0)
    kx, kp = jax.random.split(key)

    # Large enough batch to take the Pallas path (nb=2 grid steps), still tiny data.
    B = 1024
    x = jax.random.normal(kx, (B, IN_DIM), jnp.float32)
    w1, b1, w2, b2 = init_params(kp)
    ref = _forward_reference(x, w1, b1, w2, b2)

    # batch-major (module-compatible) path
    out = jax.block_until_ready(network_forward(x, w1, b1, w2, b2))
    assert out.shape == (B, OUT_DIM)
    assert jnp.allclose(out, ref, atol=2e-5, rtol=2e-5), float(
        jnp.max(jnp.abs(out - ref)))

    # feature-major path (no layout round-trips)
    yT = jax.block_until_ready(network_forward_fm(x.T, w1, b1, w2, b2))
    assert yT.shape == (OUT_DIM, B)
    assert jnp.allclose(yT.T, ref, atol=2e-5, rtol=2e-5)

    # ragged batch (exercises the batch-pad + slice path)
    out_rag = jax.block_until_ready(network_forward(x[:1000], w1, b1, w2, b2))
    assert jnp.allclose(out_rag, ref[:1000], atol=2e-5, rtol=2e-5)

    # tiny-batch (non-kernel) dispatch path
    out_small = network_forward(x[:8], w1, b1, w2, b2)
    assert jnp.allclose(out_small, ref[:8], atol=2e-5, rtol=2e-5)

    print("KERNEL_OK")
</pallas_src>

<mosaic_0001>
module attributes {stable_mosaic.version = 11 : i64} {
  func.func @mlp_kernel(%arg0: i32, %arg1: memref<5x512xf32, #tpu.memory_space<vmem>>, %arg2: memref<56x5xf32, #tpu.memory_space<vmem>>, %arg3: memref<56x1xf32, #tpu.memory_space<vmem>>, %arg4: memref<4x56xf32, #tpu.memory_space<vmem>>, %arg5: memref<4x1xf32, #tpu.memory_space<vmem>>, %arg6: memref<4x512xf32, #tpu.memory_space<vmem>>) attributes {dimension_semantics = [#tpu.dimension_semantics<parallel>], iteration_bounds = array<i64: 2>, scalar_prefetch = 0 : i64, scratch_operands = 0 : i64, tpu.core_type = #tpu.core_type<tc>, window_params = [{transform_indices = @transform_0, window_bounds = array<i64: 5, 512>}, {pipeline_mode = #tpu.pipeline_mode<synchronous>, transform_indices = @transform_1, window_bounds = array<i64: 56, 5>}, {pipeline_mode = #tpu.pipeline_mode<synchronous>, transform_indices = @transform_2, window_bounds = array<i64: 56, 1>}, {pipeline_mode = #tpu.pipeline_mode<synchronous>, transform_indices = @transform_3, window_bounds = array<i64: 4, 56>}, {pipeline_mode = #tpu.pipeline_mode<synchronous>, transform_indices = @transform_4, window_bounds = array<i64: 4, 1>}, {transform_indices = @transform_5, window_bounds = array<i64: 4, 512>}]} {
    %c0 = arith.constant 0 : index
    %c0_0 = arith.constant 0 : index
    %0 = vector.load %arg1[%c0, %c0_0] : memref<5x512xf32, #tpu.memory_space<vmem>>, vector<5x512xf32>
    %c0_1 = arith.constant 0 : index
    %c0_2 = arith.constant 0 : index
    %1 = vector.load %arg2[%c0_1, %c0_2] : memref<56x5xf32, #tpu.memory_space<vmem>>, vector<56x5xf32>
    %cst = arith.constant dense<0.000000e+00> : vector<56x512xf32>
    %2 = tpu.matmul %1, %0, %cst {dimension_numbers = #tpu.dot_dimension_numbers<[1], [0], [0], [1], [0, 0, 1, 1], [], []>} : vector<56x5xf32>, vector<5x512xf32>, vector<56x512xf32> -> vector<56x512xf32>
    %c0_3 = arith.constant 0 : index
    %c0_4 = arith.constant 0 : index
    %3 = vector.load %arg3[%c0_3, %c0_4] : memref<56x1xf32, #tpu.memory_space<vmem>>, vector<56x1xf32>
    %4 = vector.broadcast %3 : vector<56x1xf32> to vector<56x512xf32>
    %5 = arith.addf %2, %4 : vector<56x512xf32>
    %6 = math.tanh %5 : vector<56x512xf32>
    %c0_5 = arith.constant 0 : index
    %c0_6 = arith.constant 0 : index
    %7 = vector.load %arg4[%c0_5, %c0_6] : memref<4x56xf32, #tpu.memory_space<vmem>>, vector<4x56xf32>
    %cst_7 = arith.constant dense<0.000000e+00> : vector<4x512xf32>
    %8 = tpu.matmul %7, %6, %cst_7 {dimension_numbers = #tpu.dot_dimension_numbers<[1], [0], [0], [1], [0, 0, 1, 1], [], []>} : vector<4x56xf32>, vector<56x512xf32>, vector<4x512xf32> -> vector<4x512xf32>
    %c0_8 = arith.constant 0 : index
    %c0_9 = arith.constant 0 : index
    %9 = vector.load %arg5[%c0_8, %c0_9] : memref<4x1xf32, #tpu.memory_space<vmem>>, vector<4x1xf32>
    %10 = vector.broadcast %9 : vector<4x1xf32> to vector<4x512xf32>
    %11 = arith.addf %8, %10 : vector<4x512xf32>
    %c0_10 = arith.constant 0 : index
    %c0_11 = arith.constant 0 : index
    %12 = vector.load %arg6[%c0_10, %c0_11] : memref<4x512xf32, #tpu.memory_space<vmem>>, vector<4x512xf32>
    tpu.vector_store %arg6[%c0_10, %c0_11], %11 {strides = array<i32>} : memref<4x512xf32, #tpu.memory_space<vmem>>, vector<4x512xf32>,
    return
  }
  func.func @transform_0(%arg0: i32) -> (i32, i32) {
    %c0_i32 = arith.constant 0 : i32
    %c0_i32_0 = arith.constant 0 : i32
    return %c0_i32, %arg0 : i32, i32
  }
  func.func @transform_1(%arg0: i32) -> (i32, i32) {
    %c0_i32 = arith.constant 0 : i32
    %c0_i32_0 = arith.constant 0 : i32
    %c0_i32_1 = arith.constant 0 : i32
    return %c0_i32, %c0_i32_0 : i32, i32
  }
  func.func @transform_2(%arg0: i32) -> (i32, i32) {
    %c0_i32 = arith.constant 0 : i32
    %c0_i32_0 = arith.constant 0 : i32
    %c0_i32_1 = arith.constant 0 : i32
    return %c0_i32, %c0_i32_0 : i32, i32
  }
  func.func @transform_3(%arg0: i32) -> (i32, i32) {
    %c0_i32 = arith.constant 0 : i32
    %c0_i32_0 = arith.constant 0 : i32
    %c0_i32_1 = arith.constant 0 : i32
    return %c0_i32, %c0_i32_0 : i32, i32
  }
  func.func @transform_4(%arg0: i32) -> (i32, i32) {
    %c0_i32 = arith.constant 0 : i32
    %c0_i32_0 = arith.constant 0 : i32
    %c0_i32_1 = arith.constant 0 : i32
    return %c0_i32, %c0_i32_0 : i32, i32
  }
  func.func @transform_5(%arg0: i32) -> (i32, i32) {
    %c0_i32 = arith.constant 0 : i32
    %c0_i32_0 = arith.constant 0 : i32
    return %c0_i32, %arg0 : i32, i32
  }
}

</mosaic_0001>

<bundles_post_ra>
// kernel: network_forward.1
= control target key start
LH: loop header
LB: loop body
LE: loop exit
PB: predicated region body
PF: predicated region fallthrough
CT: control target
= control target key end

     0   :  { %10 = vsyncpa [#allocation3], 0  ;;  %s1137_s0 = inlined_call_operand.vmem [shape: f32[5,1024], index: 0, kind: input, shape index: {}]   ;;  %s1138_s1 = inlined_call_operand.vmem [shape: f32[56,5], index: 1, kind: input, shape index: {}]   ;;  %s1139_s2 = inlined_call_operand.vmem [shape: f32[56,1], index: 2, kind: input, shape index: {}]   ;;  %s1140_s3 = inlined_call_operand.vmem [shape: f32[4,56], index: 3, kind: input, shape index: {}]   ;;  %s1141_s4 = inlined_call_operand.vmem [shape: f32[4,1], index: 4, kind: input, shape index: {}]   ;;  %s1142_s5 = inlined_call_operand.hbm [shape: f32[4,1024], index: 5, kind: output, shape index: {}]  }
   0x1   :  { %12 = vsyncpa [#allocation3 + $0x1], 0  ;;  %s917_s18 = smov 0   ;;  %s919_s19 = smov 0  }
   0x2   :  { %s921_s20 = smov 0   ;;  %s923_s21 = smov 0  }
   0x3 LB: > { %s938_s22 = sadd.s32 4294967295, %s884_s21   ;;  %s674_s23 = sadd.s32 4294967294, %s884_s21   ;;  %s884_s21 = sphi %s923_s21, %s1148_s21   ;;  %s880_s20 = sphi %s921_s20, %s1147_s20   ;;  %s876_s19 = sphi %s919_s19, %s1146_s19   ;;  %s872_s18 = sphi %s917_s18, %s1145_s18  }
   0x4   : > { %s942_s24 = sadd.s32 1, %s884_s21   ;;  %s135_s25 = sadd.s32 1, %s880_s20 }
   0x5   : > { %s132_s26 = ssub.s32 %s884_s21, %s942_s24  ;;  %p145_p0 = scmp.ne.s32.totalorder %s880_s20, %s876_s19 }
   0x6   : > { %p133_p1 = scmp.eq.s32.totalorder %s132_s26, 0  ;;  %p146_p2 = scmp.eq.s32.totalorder %s938_s22, 1 }
   0x7   : > { %p151_p3 = scmp.ne.s32.totalorder %s876_s19, %s872_s18  ;;  %p152_p4 = scmp.eq.s32.totalorder %s674_s23, 1 }
   0x8   : > { %s953_s27 = scalar_select %p133_p1, %s880_s20, %s135_s25  }
   0x9   : > { %p955_p5 = por %p146_p2, %p145_p0  ;;  %p959_p6 = por %p152_p4, %p151_p3 }
   0xa   : > { %p677_p7 = scmp.ge.s32.totalorder %s884_s21, 1  ;;  %p191_p8 = scmp.lt.s32.totalorder %s884_s21, 3 }
   0xc   : > { %p192_p9 = pnand %p677_p7, %p191_p8 }
   0xd   : > { %s679_s30 = sshll.u32 (!%p192_p9), %s938_s22, 2  ;;  %s216_s10 = sand.u32 (!%p192_p9), 1, %s876_s19  }
   0xe   : > { %195 = sbr.rel (%p192_p9) target bundleno = 369 (0x171), region = 40  ;;  %p220_p10 = scmp.lt.s32.totalorder (!%p192_p9), %s679_s30, 7 }
   0xf   : > { %s722_s13 = sshll.u32 (!%p192_p9), %s938_s22, 4  ;;  %s599_s25 = scalar_lea.sflag (!%p192_p9), [#allocation3], %s216_s10 }
  0x10   : > { %s610_s16 = scalar_lea.hbm (!%p192_p9), %s1142_s5, %s722_s13  ;;  %s842_s7 = scalar_lea.hbm (!%p192_p9), %s1142_s5, 32 }
  0x11   : > { %s614_s23 = sshll.u32 (!%p192_p9), %s610_s16, 4  ;;  %s615_s23 = int_to_ptr.hbm [resolvable:$true] %s614_s23 }
  0x12   : > { %s836_s26 = sshra.s32 (!%p192_p9), %s615_s23, 4  ;;  %s837_s26 = int_to_ptr.hbm [resolvable:$true] %s836_s26 }
  0x13   : > { %v243_v0 = vld [vmem:[%s1139_s2 + $0x30] sm:$0xff]  ;;  %v886_v1 = vmov 0   ;;  %s1150_s30 = smov (!%p220_p10, %s679_s30), 7  ;;  %vm301_vm0 = vcmask 1044480   ;;  %v230_v2 = vld [vmem:[%s1138_s1] sm:$0xff]  ;;  %vm279_vm1 = vcmask 39936   ;;  %p843_p0 = scmp.lt.s32.totalorder %s837_s26, %s1142_s5 }
  0x14   : > { %763 = vset.pattern.permute.xlu0 %v886_v1  ;;  %764 = vset.pattern.permute.xlu1 %v886_v1  ;;  %s680_s8 = sshll.u32 %s1150_s30, 3  ;;  %v242_v7 = vld [vmem:[%s1139_s2 + $0x28] sm:$0xff]  ;;  %v241_v8 = vld [vmem:[%s1139_s2 + $0x20] sm:$0xff]  ;;  %v240_v11 = vld [vmem:[%s1139_s2 + $0x18] sm:$0xff]  ;;  %vm501_vm2 = vcmask 457728   ;;  %vm591_vm3 = vcmask 1043456  }
  0x15   : > { %276 = vperm.xlu0 %763, %v243_v0   ;;  %765 = vset.pattern.permute.xlu2 %v886_v1  ;;  %s223_s11 = scalar_lea.vmem %s1137_s0, %s680_s8  ;;  %v231_v9 = vld [vmem:[%s1138_s1 + $0x8] sm:$0xff]  ;;  %v237_v10 = vld [vmem:[%s1139_s2] sm:$0xff]  ;;  %v239_v12 = vld [vmem:[%s1139_s2 + $0x10] sm:$0xff]  ;;  %s838_s22 = scalar_lea.hbm %s837_s26, 16 }
  0x16   : > { %v226_v3 = vld [vmem:[%s223_s11] sm:$0x1f]  ;;  %v227_v4 = vld [vmem:[%s223_s11 + $0x8] sm:$0x1f]  ;;  %v228_v5 = vld [vmem:[%s223_s11 + $0x10] sm:$0x1f]  ;;  %266 = vperm.xlu1 %764, %v241_v8   ;;  %256 = vperm.xlu2 %765, %v239_v12   ;;  %p839_p11 = scmp.ne.s32.totalorder %s837_s26, %s838_s22  ;;  %p844_p1 = scmp.lt.s32.totalorder %s842_s7, %s838_s22 }
  0x17   : > { %681 = vmatpush.msk.msra.mxu0 %vm301_vm0, %v226_v3  ;;  %689 = vmatpush.msk.msra.mxu1 %vm301_vm0, %v227_v4  ;;  %v229_v6 = vld [vmem:[%s223_s11 + $0x18] sm:$0x1f]  ;;  %v232_v13 = vld [vmem:[%s1138_s1 + $0x10] sm:$0xff]  ;;  %v238_v14 = vld [vmem:[%s1139_s2 + $0x8] sm:$0xff]  ;;  %s678_s11 = sshll.u32 %s216_s10, 4 }
  0x18   : > { %697 = vmatpush.msk.msra.mxu2 %vm301_vm0, %v228_v5  ;;  %705 = vmatpush.msk.msra.mxu3 %vm301_vm0, %v229_v6  ;;  %v495_v15 = vld [vmem:[%s1141_s4] sm:$0xf]  ;;  %v233_v16 = vld [vmem:[%s1138_s1 + $0x18] sm:$0xff]  ;;  %v235_v18 = vld [vmem:[%s1138_s1 + $0x28] sm:$0xff]  ;;  %s218_s12 = scalar_lea.vmem [#allocation2], %s678_s11  ;;  %p840_p12 = pnand %p839_p11, %p955_p5 }
  0x19   : > { %682 = vmatmul.msk.f32.vlgmr.msra.gmra.mxu0 %vm279_vm1, %v230_v2  ;;  %690 = vmatmul.msk.f32.vlgmr.msra.gmra.mxu1 %vm279_vm1, %v230_v2  ;;  %v234_v17 = vld [vmem:[%s1138_s1 + $0x20] sm:$0xff]  ;;  %v236_v19 = vld [vmem:[%s1138_s1 + $0x30] sm:$0xff]  ;;  %s612_s17 = sshll.u32 %s218_s12, 4  ;;  %p845_p2 = por %p844_p1, %p843_p0  ;;  %s613_s17 = int_to_ptr.vmem [resolvable:$true] %s612_s17 }
  0x1a   : > { %698 = vmatmul.msk.f32.vlgmr.msra.gmra.mxu2 %vm279_vm1, %v230_v2  ;;  %706 = vmatmul.msk.f32.vlgmr.msra.gmra.mxu3 %vm279_vm1, %v230_v2  ;;  %p841_p13 = pneg %p840_p12 }
  0x1c   : > { %p846_p3 = pnand %p845_p2, %p841_p13 }
  0x1d   : > { %271 = vperm.xlu0 %763, %v242_v7  }
  0x1e   : > { %261 = vperm.xlu1 %764, %v240_v11   ;;  %251 = vperm.xlu2 %765, %v238_v14  }
  0x21   : > { %683 = vmatmul.msk.f32.gmra.mxu0 %vm279_vm1, %v231_v9  ;;  %691 = vmatmul.msk.f32.gmra.mxu1 %vm279_vm1, %v231_v9 }
  0x22   : > { %699 = vmatmul.msk.f32.gmra.mxu2 %vm279_vm1, %v231_v9  ;;  %707 = vmatmul.msk.f32.gmra.mxu3 %vm279_vm1, %v231_v9 }
  0x25   : > { %246 = vperm.xlu0 %763, %v237_v10  }
  0x26   : > { %498 = vperm.xlu1 %764, %v495_v15  }
  0x29   : > { %684 = vmatmul.msk.f32.gmra.mxu0 %vm279_vm1, %v232_v13  ;;  %692 = vmatmul.msk.f32.gmra.mxu1 %vm279_vm1, %v232_v13 }
  0x2a   : > { %700 = vmatmul.msk.f32.gmra.mxu2 %vm279_vm1, %v232_v13  ;;  %708 = vmatmul.msk.f32.gmra.mxu3 %vm279_vm1, %v232_v13 }
  0x31   : > { %685 = vmatmul.msk.f32.gmra.mxu0 %vm279_vm1, %v233_v16  ;;  %693 = vmatmul.msk.f32.gmra.mxu1 %vm279_vm1, %v233_v16 }
  0x32   : > { %701 = vmatmul.msk.f32.gmra.mxu2 %vm279_vm1, %v233_v16  ;;  %709 = vmatmul.msk.f32.gmra.mxu3 %vm279_vm1, %v233_v16 }
  0x39   : > { %686 = vmatmul.msk.f32.gmra.mxu0 %vm279_vm1, %v234_v17  ;;  %694 = vmatmul.msk.f32.gmra.mxu1 %vm279_vm1, %v234_v17 }
  0x3a   : > { %702 = vmatmul.msk.f32.gmra.mxu2 %vm279_vm1, %v234_v17  ;;  %710 = vmatmul.msk.f32.gmra.mxu3 %vm279_vm1, %v234_v17 }
  0x41   : > { %687 = vmatmul.msk.f32.gmra.mxu0 %vm279_vm1, %v235_v18  ;;  %695 = vmatmul.msk.f32.gmra.mxu1 %vm279_vm1, %v235_v18 }
  0x42   : > { %703 = vmatmul.msk.f32.gmra.mxu2 %vm279_vm1, %v235_v18  ;;  %711 = vmatmul.msk.f32.gmra.mxu3 %vm279_vm1, %v235_v18 }
  0x49   : > { %688 = vmatmul.msk.f32.gmra.mxu0 %vm279_vm1, %v236_v19  ;;  %696 = vmatmul.msk.f32.gmra.mxu1 %vm279_vm1, %v236_v19 }
  0x4a   : > { %704 = vmatmul.msk.f32.gmra.mxu2 %vm279_vm1, %v236_v19  ;;  %712 = vmatmul.msk.f32.gmra.mxu3 %vm279_vm1, %v236_v19 }
  0x70   : > { %v1054_v36 = vpop.permute.xlu2 %256 }
  0x78   : > { %v1064_v49 = vpop.permute.xlu2 %251 }
  0x87   : > { %v277_v30 = vpop.permute.xlu0 %276 }
  0x88   : > { %v267_v41 = vpop.permute.xlu1 %266 }
  0x8f   : > { %v272_v35 = vpop.permute.xlu0 %271 }
  0x90   : > { %v262_v54 = vpop.permute.xlu1 %261 }
  0x96   : > { %v331_v20 = vpop.f32.mrf.mxu0  ;;  %v369_v21 = vpop.f32.mrf.mxu1 }
  0x97   : > { %v1060_v42 = vpop.permute.xlu0 %246 }
  0x98   : > { %v332_v45 = vadd.f32 %v331_v20, %v1060_v42  ;;  %v370_v48 = vadd.f32 %v369_v21, %v1060_v42 }
  0x9a   : > { %766 = vtanh.f32 %v332_v45 }
  0x9b   : > { %768 = vtanh.f32 %v370_v48  ;;  %v499_v48 = vpop.permute.xlu1 %498 }
  0x9d   : > { %v1042_v22 = vpop.f32.mrf.mxu2  ;;  %v1044_v23 = vpop.f32.mrf.mxu3 }
  0x9e   : > { %v334_v24 = vpop.f32.mrf.mxu0  ;;  %v372_v25 = vpop.f32.mrf.mxu1 }
  0x9f   : > { %v335_v50 = vadd.f32 %v334_v24, %v1064_v49  ;;  %v373_v51 = vadd.f32 %v372_v25, %v1064_v49 }
  0xa0   : > { %v1070_v63 = vpop.eup %766 }
  0xa1   : > { %770 = vtanh.f32 %v335_v50  ;;  %v1072_v1 = vpop.eup %768 }
  0xa2   : > { %772 = vtanh.f32 %v373_v51 }
  0xa5   : > { %v1046_v26 = vpop.f32.mrf.mxu2  ;;  %v1048_v27 = vpop.f32.mrf.mxu3 }
  0xa6   : > { %v337_v28 = vpop.f32.mrf.mxu0  ;;  %v375_v29 = vpop.f32.mrf.mxu1 }
  0xa7   : > { %v338_v52 = vadd.f32 %v337_v28, %v1054_v36  ;;  %v376_v53 = vadd.f32 %v375_v29, %v1054_v36  ;;  %v1074_v3 = vpop.eup %770 }
  0xa8   : > { %v1076_v5 = vpop.eup %772 }
  0xa9   : > { %774 = vtanh.f32 %v338_v52 }
  0xaa   : > { %776 = vtanh.f32 %v376_v53 }
  0xad   : > { %v1050_v31 = vpop.f32.mrf.mxu2  ;;  %v1052_v32 = vpop.f32.mrf.mxu3 }
  0xae   : > { %v340_v33 = vpop.f32.mrf.mxu0  ;;  %v378_v34 = vpop.f32.mrf.mxu1 }
  0xaf   : > { %v341_v55 = vadd.f32 %v340_v33, %v262_v54  ;;  %v379_v56 = vadd.f32 %v378_v34, %v262_v54  ;;  %v775_v7 = vpop.eup %774  ;;  %v452_v34 = vadd.f32 %v1052_v32, %v1054_v36 }
  0xb0   : > { %v777_v8 = vpop.eup %776 }
  0xb1   : > { %778 = vtanh.f32 %v341_v55 }
  0xb2   : > { %780 = vtanh.f32 %v379_v56 }
  0xb5   : > { %v1056_v37 = vpop.f32.mrf.mxu2  ;;  %v1058_v38 = vpop.f32.mrf.mxu3 }
  0xb6   : > { %v343_v39 = vpop.f32.mrf.mxu0  ;;  %v381_v40 = vpop.f32.mrf.mxu1  ;;  %v417_v24 = vadd.f32 %v1056_v37, %v262_v54  ;;  %v455_v28 = vadd.f32 %v1058_v38, %v262_v54  ;;  %v411_v37 = vadd.f32 %v1046_v26, %v1064_v49  ;;  %v446_v26 = vadd.f32 %v1044_v23, %v1060_v42  ;;  %v494_v23 = vld [vmem:[%s1140_s3] sm:$0xf] }
  0xb7   : > { %v344_v4 = vadd.f32 %v343_v39, %v267_v41  ;;  %v382_v6 = vadd.f32 %v381_v40, %v267_v41  ;;  %v779_v11 = vpop.eup %778  ;;  %v449_v39 = vadd.f32 %v1048_v27, %v1064_v49  ;;  %v408_v40 = vadd.f32 %v1042_v22, %v1060_v42 }
  0xb8   : > { %v781_v15 = vpop.eup %780 }
  0xbd   : > { %v419_v43 = vpop.f32.mrf.mxu2  ;;  %v457_v44 = vpop.f32.mrf.mxu3 }
  0xbe   : > { %v346_v46 = vpop.f32.mrf.mxu0  ;;  %v384_v47 = vpop.f32.mrf.mxu1  ;;  %v420_v18 = vadd.f32 %v419_v43, %v267_v41  ;;  %v458_v20 = vadd.f32 %v457_v44, %v267_v41 }
  0xbf   : > { %v347_v0 = vadd.f32 %v346_v46, %v272_v35  ;;  %v385_v2 = vadd.f32 %v384_v47, %v272_v35 }
  0xc5   : > { %v422_v57 = vpop.f32.mrf.mxu2  ;;  %v460_v58 = vpop.f32.mrf.mxu3 }
  0xc6   : > { %v349_v59 = vpop.f32.mrf.mxu0  ;;  %v387_v60 = vpop.f32.mrf.mxu1  ;;  %v423_v12 = vadd.f32 %v422_v57, %v272_v35  ;;  %v461_v16 = vadd.f32 %v460_v58, %v272_v35 }
  0xc7   : > { %v350_v61 = vadd.f32 %v349_v59, %v277_v30  ;;  %v388_v62 = vadd.f32 %v387_v60, %v277_v30 }
  0xc9   : > { %782 = vtanh.f32 %v350_v61 }
  0xca   : > { %784 = vtanh.f32 %v388_v62 }
  0xcb   : > { %786 = vtanh.f32 %v347_v0 }
  0xcc   : > { %788 = vtanh.f32 %v385_v2 }
  0xcd   : > { %v425_v9 = vpop.f32.mrf.mxu2  ;;  %v463_v10 = vpop.f32.mrf.mxu3  ;;  %790 = vtanh.f32 %v344_v4 }
  0xce   : > { %v426_v13 = vadd.f32 %v425_v9, %v277_v30  ;;  %v464_v14 = vadd.f32 %v463_v10, %v277_v30  ;;  %792 = vtanh.f32 %v382_v6  ;;  %v414_v30 = vadd.f32 %v1050_v31, %v1054_v36 }
  0xcf   : > { %v783_v17 = vpop.eup %782 }
  0xd0   : > { %794 = vtanh.f32 %v426_v13  ;;  %v785_v19 = vpop.eup %784  ;;  %514 = vmatpush.msrb.mxu0 %v783_v17 }
  0xd1   : > { %796 = vtanh.f32 %v464_v14  ;;  %v787_v21 = vpop.eup %786  ;;  %534 = vmatpush.msrb.mxu1 %v785_v19 }
  0xd2   : > { %798 = vtanh.f32 %v423_v12  ;;  %v789_v25 = vpop.eup %788  ;;  %515 = vmatpush.msrb.mxu0 %v787_v21 }
  0xd3   : > { %800 = vtanh.f32 %v461_v16  ;;  %v791_v29 = vpop.eup %790  ;;  %535 = vmatpush.msrb.mxu1 %v789_v25 }
  0xd4   : > { %802 = vtanh.f32 %v420_v18  ;;  %v793_v33 = vpop.eup %792  ;;  %516 = vmatpush.msrb.mxu0 %v791_v29 }
  0xd5   : > { %804 = vtanh.f32 %v458_v20  ;;  %536 = vmatpush.msrb.mxu1 %v793_v33 }
  0xd6   : > { %v795_v35 = vpop.eup %794  ;;  %806 = vtanh.f32 %v417_v24  ;;  %517 = vmatpush.msrb.mxu0 %v779_v11 }
  0xd7   : > { %v797_v38 = vpop.eup %796  ;;  %808 = vtanh.f32 %v455_v28  ;;  %554 = vmatpush.msrb.mxu2 %v795_v35  ;;  %537 = vmatpush.msrb.mxu1 %v781_v15 }
  0xd8   : > { %v799_v31 = vpop.eup %798  ;;  %810 = vtanh.f32 %v414_v30  ;;  %574 = vmatpush.msrb.mxu3 %v797_v38  ;;  %518 = vmatpush.msrb.mxu0 %v775_v7 }
  0xd9   : > { %v801_v32 = vpop.eup %800  ;;  %812 = vtanh.f32 %v452_v34  ;;  %555 = vmatpush.msrb.mxu2 %v799_v31  ;;  %538 = vmatpush.msrb.mxu1 %v777_v8 }
  0xda   : > { %v803_v36 = vpop.eup %802  ;;  %814 = vtanh.f32 %v411_v37  ;;  %575 = vmatpush.msrb.mxu3 %v801_v32  ;;  %519 = vmatpush.msrb.mxu0 %v1074_v3 }
  0xdb   : > { %v805_v27 = vpop.eup %804  ;;  %816 = vtanh.f32 %v449_v39  ;;  %556 = vmatpush.msrb.mxu2 %v803_v36  ;;  %539 = vmatpush.msrb.mxu1 %v1076_v5 }
  0xdc   : > { %v807_v22 = vpop.eup %806  ;;  %818 = vtanh.f32 %v408_v40  ;;  %576 = vmatpush.msrb.mxu3 %v805_v27  ;;  %520 = vmatpush.msrb.mxu0 %v1070_v63 }
  0xdd   : > { %v809_v41 = vpop.eup %808  ;;  %820 = vtanh.f32 %v446_v26  ;;  %557 = vmatpush.msrb.mxu2 %v807_v22  ;;  %540 = vmatpush.msrb.mxu1 %v1072_v1 }
  0xde   : > { %v811_v42 = vpop.eup %810  ;;  %577 = vmatpush.msrb.mxu3 %v809_v41  ;;  %713 = vmatmul.msk.f32.vlgmr.msrb.gmra.mxu0 %vm501_vm2, %v494_v23 }
  0xdf   : > { %v813_v43 = vpop.eup %812  ;;  %714 = vmatmul.msk.f32.vlgmr.msrb.gmra.mxu1 %vm501_vm2, %v494_v23  ;;  %558 = vmatpush.msrb.mxu2 %v811_v42 }
  0xe0   : > { %v815_v44 = vpop.eup %814  ;;  %578 = vmatpush.msrb.mxu3 %v813_v43 }
  0xe1   : > { %v817_v45 = vpop.eup %816  ;;  %559 = vmatpush.msrb.mxu2 %v815_v44 }
  0xe2   : > { %v819_v46 = vpop.eup %818  ;;  %579 = vmatpush.msrb.mxu3 %v817_v45 }
  0xe3   : > { %v821_v47 = vpop.eup %820  ;;  %560 = vmatpush.msrb.mxu2 %v819_v46 }
  0xe4   : > { %580 = vmatpush.msrb.mxu3 %v821_v47  ;;  %715 = vmatmul.msk.f32.vlgmr.msrb.gmra.mxu2 %vm501_vm2, %v494_v23 }
  0xe5   : > { %716 = vmatmul.msk.f32.vlgmr.msrb.gmra.mxu3 %vm501_vm2, %v494_v23 }
 0x15b   : > { %v522_v49 = vpop.f32.mrf.mxu0 }
 0x15c   : > { %v542_v50 = vpop.f32.mrf.mxu1  ;;  %v523_v52 = vadd.f32 %v522_v49, %v499_v48 }
 0x15d   : > { %v543_v51 = vadd.f32 %v542_v50, %v499_v48 }
 0x15f   : > { %v589_v53 = vrot.slane %v543_v51, 4 }
 0x161   : > { %v592_v54 = vsel %vm591_vm3, %v523_v52, %v589_v53 }
 0x162   : > { %596 = vst [vmem:[%s218_s12] sm:$0xff] %v592_v54 }
 0x167   : > { %v562_v55 = vpop.f32.mrf.mxu2 }
 0x168   : > { %v582_v56 = vpop.f32.mrf.mxu3  ;;  %v563_v58 = vadd.f32 %v562_v55, %v499_v48 }
 0x169   : > { %v583_v57 = vadd.f32 %v582_v56, %v499_v48 }
 0x16b   : > { %v590_v59 = vrot.slane %v583_v57, 4 }
 0x16d   : > { %v593_v60 = vsel %vm591_vm3, %v563_v58, %v590_v59 }
 0x16e   : > { %597 = vst [vmem:[%s218_s12 + $0x8] sm:$0xff] %v593_v60 }
 0x16f   : > { %849 = shalt.err (!%p846_p3)
}
 0x170   : > { %723 = dma.vmem_to_hbm [thread:$0]  (%p955_p5), %s613_s17, 256, %s615_s23, %s599_s25  }
 0x171 PF: > { %p729_p4 = scmp.ge.s32.totalorder %s884_s21, 2  ;;  %s626_s10 = sand.u32 1, %s872_s18  }
 0x172   : > { %s627_s11 = scalar_lea.sflag [#allocation3], %s626_s10 }
 0x173   : > { %p726_p7 = pnand %p729_p4, %p959_p6 }
 0x175   : > { %p727_p8 = pneg %p726_p7 }
 0x177   : > { %867 = dma.done.wait (%p727_p8), %s627_s11, 256  }
 0x178   : > { %869 = vsyncadd (%p727_p8), %s627_s11, 4294967040  ;;  %p15_p9 = scmp.ge.s32.totalorder %s942_s24, 4   ;;  %s1145_s18 = smov %s876_s19 }
 0x179   : > { %s1146_s19 = smov %s880_s20  ;;  %s1147_s20 = smov %s953_s27 }
 0x17a   : > { %s1148_s21 = smov %s942_s24  ;;  %17 = sbr.rel (!%p15_p9) target bundleno = 3 (0x3), region = 75 }
 0x17f   :  { %633 = vsyncpa [#allocation3], 1 }
 0x180   :  { %635 = vsyncpa [#allocation3 + $0x1], 1 }

</bundles_post_ra>
